<compile_context>
chip_gen: v6e
topology: v6e:2x2x1
jax: 0.10.0
libtpu: 0.0.40
codegen_flags: <defaults>
</compile_context>

<pallas_src>
import functools

import jax
import jax.numpy as jnp
from jax.experimental import pallas as pl
from jax.experimental.pallas import tpu as pltpu


def _round_up(x, m):
    return -(-x // m) * m


# ----------------------------------------------------------------------------
# Kernel
# ----------------------------------------------------------------------------
def attention_kernel(a_ref, t_ref, v_ref,
                     w1a_ref, w1t_ref, w1v_ref,
                     w2s_ref,      # (4, H1, H2) bf16: [w2_a, w2_t, w2_v, w2_attmlp]
                     w1ms_ref,     # (3, H2, H1) bf16: attention-MLP layer-1 split-K
                     wtail_ref,    # (H2, ATT+HEAD) bf16: [fc_att | fc_out_1|fc_out_2]
                     bias_ref,     # (9, BW) f32: all biases
                     out_ref,      # (TB, H2+HEAD) f32: [fused | heads]
                     *, att_w):
    f32 = jnp.float32
    bf16 = jnp.bfloat16
    H1 = w2s_ref.shape[1]
    H2 = w2s_ref.shape[2]

    def dot(a, b):
        return jnp.dot(a, b, preferred_element_type=f32)

    def modality(x_ref, w1_ref, k):
        # Linear -> ReLU -> (Dropout == identity in eval), twice.
        x = x_ref[...].astype(bf16)            # f32 HBM stream; bf16 cast in-kernel
        h1 = jnp.maximum(dot(x, w1_ref[...]) + bias_ref[k:k + 1, :H1], 0.0)
        return jnp.maximum(dot(h1.astype(bf16), w2s_ref[k]) +
                           bias_ref[4 + k:5 + k, :H2], 0.0)

    ah = modality(a_ref, w1a_ref, 0)           # (TB, H2) f32
    th = modality(t_ref, w1t_ref, 1)
    vh = modality(v_ref, w1v_ref, 2)

    # attention_mlp on cat([ah, th, vh], dim=1) via split-K dots (no concat copy).
    m1 = (dot(ah.astype(bf16), w1ms_ref[0]) +
          dot(th.astype(bf16), w1ms_ref[1]) +
          dot(vh.astype(bf16), w1ms_ref[2]) + bias_ref[3:4, :H1])
    m1 = jnp.maximum(m1, 0.0)
    m2 = jnp.maximum(dot(m1.astype(bf16), w2s_ref[3]) + bias_ref[7:8, :H2], 0.0)

    # fc_att -> lane-dense (TB, att_w) logits; only the first 3 columns are real.
    att = dot(m2.astype(bf16), wtail_ref[:, :att_w]) + bias_ref[8:9, :att_w]

    # fused_feat = matmul(stack([ah, th, vh], 2), att[..., None]).squeeze()
    fused = att[:, 0:1] * ah + att[:, 1:2] * th + att[:, 2:3] * vh
    out_ref[:, :H2] = fused.astype(out_ref.dtype)

    # fc_out_1 / fc_out_2 fused into one lane-dense 128-wide head matmul.
    heads = dot(fused.astype(bf16), wtail_ref[:, att_w:]) + bias_ref[8:9, att_w:]
    out_ref[:, H2:] = heads.astype(out_ref.dtype)


# ----------------------------------------------------------------------------
# One-time parameter packing (hoisted out of the per-call path)
# ----------------------------------------------------------------------------
def prepare_params(params):
    (w1a, b1a), (w2a, b2a) = params["audio"]
    (w1t, b1t), (w2t, b2t) = params["text"]
    (w1v, b1v), (w2v, b2v) = params["video"]
    (w1m, b1m), (w2m, b2m) = params["att_mlp"]
    watt, batt = params["fc_att"]
    we, be = params["fc_out_1"]
    wv, bv = params["fc_out_2"]

    H1, H2 = w1a.shape[1], w2a.shape[1]
    n_att = watt.shape[1]
    d1, d2 = we.shape[1], wv.shape[1]
    LANE = 128
    ATT = _round_up(max(n_att, 1), LANE)
    HEAD = _round_up(max(d1 + d2, 1), LANE)
    BW = max(H1, H2, ATT + HEAD)

    f32, bf16 = jnp.float32, jnp.bfloat16

    # First-layer weights (different K per modality) stay separate, bf16.
    w1a_b, w1t_b, w1v_b = w1a.astype(bf16), w1t.astype(bf16), w1v.astype(bf16)

    # Modality second layers + attention-MLP second layer stacked.
    w2s = jnp.stack([w2a, w2t, w2v, w2m], axis=0).astype(bf16)        # (4,H1,H2)

    # Attention-MLP first layer split per modality (concat-free split-K).
    w1ms = w1m.reshape(3, H2, H1).astype(bf16)                        # (3,H2,H1)

    # fc_att / fc_out_1 / fc_out_2 packed into one lane-dense tail slab.
    wtail = jnp.zeros((H2, ATT + HEAD), f32)
    wtail = wtail.at[:, :n_att].set(watt)
    wtail = wtail.at[:, ATT:ATT + d1].set(we)
    wtail = wtail.at[:, ATT + d1:ATT + d1 + d2].set(wv)
    wtail = wtail.astype(bf16)

    # All biases in one small f32 slab (epilogue stays f32).
    bias = jnp.zeros((9, BW), f32)
    bias = bias.at[0, :H1].set(b1a[0]).at[1, :H1].set(b1t[0]).at[2, :H1].set(b1v[0])
    bias = bias.at[3, :H1].set(b1m[0])
    bias = bias.at[4, :H2].set(b2a[0]).at[5, :H2].set(b2t[0]).at[6, :H2].set(b2v[0])
    bias = bias.at[7, :H2].set(b2m[0])
    bias = bias.at[8, :n_att].set(batt[0])
    bias = bias.at[8, ATT:ATT + d1].set(be[0])
    bias = bias.at[8, ATT + d1:ATT + d1 + d2].set(bv[0])

    packed = (w1a_b, w1t_b, w1v_b, w2s, w1ms, wtail, bias)
    dims = dict(H1=H1, H2=H2, d1=d1, d2=d2, n_att=n_att, ATT=ATT, HEAD=HEAD)
    return packed, dims


# ----------------------------------------------------------------------------
# Wrapper (no per-call parameter work; only tiling + output slicing)
# ----------------------------------------------------------------------------
def attention_forward(audio, text, video, packed, dims):
    w1a_b, w1t_b, w1v_b, w2s, w1ms, wtail, bias = packed
    H1, H2 = dims["H1"], dims["H2"]
    d1, d2 = dims["d1"], dims["d2"]
    ATT, HEAD = dims["ATT"], dims["HEAD"]

    B, Da = audio.shape
    Dt, Dv = text.shape[1], video.shape[1]

    # Batch tiling: >= 2 tiles once B >= 16 (feeds both v7x TensorCores),
    # tiles capped at 256 rows (VMEM is nowhere near the limit).
    if B < 16:
        TB = _round_up(B, 8)
    else:
        TB = min(256, _round_up(-(-B // 2), 8))
    padded_B = _round_up(B, TB)
    pad = padded_B - B
    if pad:
        audio = jnp.pad(audio, ((0, pad), (0, 0)))
        text = jnp.pad(text, ((0, pad), (0, 0)))
        video = jnp.pad(video, ((0, pad), (0, 0)))

    n_tiles = padded_B // TB
    OUT_W = H2 + HEAD

    batch_spec = lambda d: pl.BlockSpec((TB, d), lambda i: (i, 0))
    # Weights are resident across the grid: constant index_map -> no re-DMA.
    full_spec = lambda arr: pl.BlockSpec(arr.shape, lambda i, n=arr.ndim: (0,) * n)
    weights = [w1a_b, w1t_b, w1v_b, w2s, w1ms, wtail, bias]

    flops = 2 * padded_B * ((Da + Dt + Dv) * H1 + 4 * H1 * H2 +
                            3 * H2 * H1 + H2 * (ATT + HEAD))
    bytes_accessed = (padded_B * (Da + Dt + Dv) * 4
                      + sum(int(w.size) * w.dtype.itemsize for w in weights)
                      + padded_B * OUT_W * 4)

    out = pl.pallas_call(
        functools.partial(attention_kernel, att_w=ATT),
        out_shape=jax.ShapeDtypeStruct((padded_B, OUT_W), jnp.float32),
        grid=(n_tiles,),
        in_specs=[batch_spec(Da), batch_spec(Dt), batch_spec(Dv)]
                 + [full_spec(w) for w in weights],
        out_specs=batch_spec(OUT_W),
        compiler_params=pltpu.CompilerParams(
            dimension_semantics=("parallel",)),
        cost_estimate=pl.CostEstimate(
            flops=flops, transcendentals=0, bytes_accessed=bytes_accessed),
    )(audio, text, video, *weights)

    fused_feat = out[:B, :H2]
    emos_out = out[:B, H2:H2 + d1]
    vals_out = out[:B, H2 + d1:H2 + d1 + d2]
    return fused_feat, emos_out, vals_out


# ----------------------------------------------------------------------------
# Params (mirror nn.Linear init; weights stored as (in, out), biases (1, out))
# ----------------------------------------------------------------------------
def linear_init(key, fan_in, fan_out):
    k1, k2 = jax.random.split(key)
    bound = float(fan_in) ** -0.5
    w = jax.random.uniform(k1, (fan_in, fan_out), jnp.float32, -bound, bound)
    b = jax.random.uniform(k2, (1, fan_out), jnp.float32, -bound, bound)
    return w, b


def mlp_init(key, in_dim, layers):
    dims = [in_dim] + list(layers)
    keys = jax.random.split(key, len(layers))
    return [linear_init(k, dims[i], dims[i + 1]) for i, k in enumerate(keys)]


def init_attention_params(key, audio_dim, text_dim, video_dim,
                          output_dim1, output_dim2, layers=(256, 128)):
    keys = jax.random.split(key, 7)
    H2 = layers[-1]
    return {
        "audio": mlp_init(keys[0], audio_dim, layers),
        "text": mlp_init(keys[1], text_dim, layers),
        "video": mlp_init(keys[2], video_dim, layers),
        "att_mlp": mlp_init(keys[3], 3 * H2, layers),
        "fc_att": linear_init(keys[4], H2, 3),
        "fc_out_1": linear_init(keys[5], H2, output_dim1),
        "fc_out_2": linear_init(keys[6], H2, output_dim2),
    }


# ----------------------------------------------------------------------------
# Plain-JAX reference (same bf16-operand / f32-accumulation dot policy)
# ----------------------------------------------------------------------------
def reference_forward(audio, text, video, params):
    bf = lambda x: x.astype(jnp.bfloat16)

    def dot(a, b):
        return jnp.dot(bf(a), bf(b), preferred_element_type=jnp.float32)

    def mlp(x, layer_params):
        h = x
        for w, b in layer_params:
            h = jnp.maximum(dot(h, w) + b, 0.0)
        return h

    ah = mlp(audio, params["audio"])
    th = mlp(text, params["text"])
    vh = mlp(video, params["video"])
    mh1 = jnp.concatenate([ah, th, vh], axis=1)
    att = mlp(mh1, params["att_mlp"])
    watt, batt = params["fc_att"]
    att = dot(att, watt) + batt                        # (B, 3) raw logits
    fused = att[:, 0:1] * ah + att[:, 1:2] * th + att[:, 2:3] * vh
    we, be = params["fc_out_1"]
    wv, bv = params["fc_out_2"]
    emos = dot(fused, we) + be
    vals = dot(fused, wv) + bv
    return fused, emos, vals


if __name__ == "__main__":
    audio_dim, text_dim, video_dim = 32, 48, 64
    output_dim1, output_dim2 = 4, 1
    layers = (256, 128)
    batch = 8

    key = jax.random.PRNGKey(0)
    k_a, k_t, k_v, k_p = jax.random.split(key, 4)
    audio = jax.random.normal(k_a, (batch, audio_dim), jnp.float32)
    text = jax.random.normal(k_t, (batch, text_dim), jnp.float32)
    video = jax.random.normal(k_v, (batch, video_dim), jnp.float32)
    params = init_attention_params(k_p, audio_dim, text_dim, video_dim,
                                   output_dim1, output_dim2, layers)

    packed, dims = prepare_params(params)     # one-time weight packing / casts
    fwd = jax.jit(lambda a, t, v, w: attention_forward(a, t, v, w, dims))

    fused_feat, emos_out, vals_out = fwd(audio, text, video, packed)
    jax.block_until_ready((fused_feat, emos_out, vals_out))

    ref_fused, ref_emos, ref_vals = reference_forward(audio, text, video, params)

    assert fused_feat.shape == (batch, layers[-1])
    assert emos_out.shape == (batch, output_dim1)
    assert vals_out.shape == (batch, output_dim2)
    assert jnp.allclose(fused_feat, ref_fused, atol=2e-3, rtol=2e-3)
    assert jnp.allclose(emos_out, ref_emos, atol=2e-3, rtol=2e-3)
    assert jnp.allclose(vals_out, ref_vals, atol=2e-3, rtol=2e-3)

    print("KERNEL_OK")
</pallas_src>

<mosaic_0001>
module attributes {stable_mosaic.version = 11 : i64} {
  func.func @attention_kernel(%arg0: i32, %arg1: memref<8x32xf32, #tpu.memory_space<vmem>>, %arg2: memref<8x48xf32, #tpu.memory_space<vmem>>, %arg3: memref<8x64xf32, #tpu.memory_space<vmem>>, %arg4: memref<32x256xbf16, #tpu.memory_space<vmem>>, %arg5: memref<48x256xbf16, #tpu.memory_space<vmem>>, %arg6: memref<64x256xbf16, #tpu.memory_space<vmem>>, %arg7: memref<4x256x128xbf16, #tpu.memory_space<vmem>>, %arg8: memref<3x128x256xbf16, #tpu.memory_space<vmem>>, %arg9: memref<128x256xbf16, #tpu.memory_space<vmem>>, %arg10: memref<9x256xf32, #tpu.memory_space<vmem>>, %arg11: memref<8x256xf32, #tpu.memory_space<vmem>>) attributes {dimension_semantics = [#tpu.dimension_semantics<parallel>], iteration_bounds = array<i64: 1>, scalar_prefetch = 0 : i64, scratch_operands = 0 : i64, tpu.core_type = #tpu.core_type<tc>, window_params = [{transform_indices = @transform_0, window_bounds = array<i64: 8, 32>}, {transform_indices = @transform_1, window_bounds = array<i64: 8, 48>}, {transform_indices = @transform_2, window_bounds = array<i64: 8, 64>}, {pipeline_mode = #tpu.pipeline_mode<synchronous>, transform_indices = @transform_3, window_bounds = array<i64: 32, 256>}, {pipeline_mode = #tpu.pipeline_mode<synchronous>, transform_indices = @transform_4, window_bounds = array<i64: 48, 256>}, {pipeline_mode = #tpu.pipeline_mode<synchronous>, transform_indices = @transform_5, window_bounds = array<i64: 64, 256>}, {pipeline_mode = #tpu.pipeline_mode<synchronous>, transform_indices = @transform_6, window_bounds = array<i64: 4, 256, 128>}, {pipeline_mode = #tpu.pipeline_mode<synchronous>, transform_indices = @transform_7, window_bounds = array<i64: 3, 128, 256>}, {pipeline_mode = #tpu.pipeline_mode<synchronous>, transform_indices = @transform_8, window_bounds = array<i64: 128, 256>}, {pipeline_mode = #tpu.pipeline_mode<synchronous>, transform_indices = @transform_9, window_bounds = array<i64: 9, 256>}, {transform_indices = @transform_10, window_bounds = array<i64: 8, 256>}]} {
    %c0 = arith.constant 0 : index
    %c0_0 = arith.constant 0 : index
    %0 = vector.load %arg1[%c0, %c0_0] : memref<8x32xf32, #tpu.memory_space<vmem>>, vector<8x32xf32>
    %1 = arith.truncf %0 : vector<8x32xf32> to vector<8x32xbf16>
    %c0_1 = arith.constant 0 : index
    %c0_2 = arith.constant 0 : index
    %2 = vector.load %arg4[%c0_1, %c0_2] : memref<32x256xbf16, #tpu.memory_space<vmem>>, vector<32x256xbf16>
    %cst = arith.constant dense<0.000000e+00> : vector<8x256xf32>
    %3 = tpu.matmul %1, %2, %cst {dimension_numbers = #tpu.dot_dimension_numbers<[1], [0], [0], [1], [0, 0, 1, 1], [], []>} : vector<8x32xbf16>, vector<32x256xbf16>, vector<8x256xf32> -> vector<8x256xf32>
    %c0_3 = arith.constant 0 : index
    %c0_4 = arith.constant 0 : index
    %4 = vector.load %arg10[%c0_3, %c0_4] : memref<9x256xf32, #tpu.memory_space<vmem>>, vector<1x256xf32>
    %5 = vector.broadcast %4 : vector<1x256xf32> to vector<8x256xf32>
    %6 = arith.addf %3, %5 : vector<8x256xf32>
    %cst_5 = arith.constant 0.000000e+00 : f32
    %7 = vector.broadcast %cst_5 : f32 to vector<8x256xf32>
    %8 = arith.maximumf %6, %7 : vector<8x256xf32>
    %9 = arith.truncf %8 : vector<8x256xf32> to vector<8x256xbf16>
    %c0_6 = arith.constant 0 : index
    %c0_7 = arith.constant 0 : index
    %c0_8 = arith.constant 0 : index
    %10 = vector.load %arg7[%c0_6, %c0_7, %c0_8] : memref<4x256x128xbf16, #tpu.memory_space<vmem>>, vector<1x256x128xbf16>
    %11 = vector.shape_cast %10 : vector<1x256x128xbf16> to vector<256x128xbf16>
    %cst_9 = arith.constant dense<0.000000e+00> : vector<8x128xf32>
    %12 = tpu.matmul %9, %11, %cst_9 {dimension_numbers = #tpu.dot_dimension_numbers<[1], [0], [0], [1], [0, 0, 1, 1], [], []>} : vector<8x256xbf16>, vector<256x128xbf16>, vector<8x128xf32> -> vector<8x128xf32>
    %c4 = arith.constant 4 : index
    %c0_10 = arith.constant 0 : index
    %13 = vector.load %arg10[%c4, %c0_10] : memref<9x256xf32, #tpu.memory_space<vmem>>, vector<1x128xf32>
    %14 = vector.broadcast %13 : vector<1x128xf32> to vector<8x128xf32>
    %15 = arith.addf %12, %14 : vector<8x128xf32>
    %cst_11 = arith.constant 0.000000e+00 : f32
    %16 = vector.broadcast %cst_11 : f32 to vector<8x128xf32>
    %17 = arith.maximumf %15, %16 : vector<8x128xf32>
    %c0_12 = arith.constant 0 : index
    %c0_13 = arith.constant 0 : index
    %18 = vector.load %arg2[%c0_12, %c0_13] : memref<8x48xf32, #tpu.memory_space<vmem>>, vector<8x48xf32>
    %19 = arith.truncf %18 : vector<8x48xf32> to vector<8x48xbf16>
    %c0_14 = arith.constant 0 : index
    %c0_15 = arith.constant 0 : index
    %20 = vector.load %arg5[%c0_14, %c0_15] : memref<48x256xbf16, #tpu.memory_space<vmem>>, vector<48x256xbf16>
    %cst_16 = arith.constant dense<0.000000e+00> : vector<8x256xf32>
    %21 = tpu.matmul %19, %20, %cst_16 {dimension_numbers = #tpu.dot_dimension_numbers<[1], [0], [0], [1], [0, 0, 1, 1], [], []>} : vector<8x48xbf16>, vector<48x256xbf16>, vector<8x256xf32> -> vector<8x256xf32>
    %c1 = arith.constant 1 : index
    %c0_17 = arith.constant 0 : index
    %22 = vector.load %arg10[%c1, %c0_17] : memref<9x256xf32, #tpu.memory_space<vmem>>, vector<1x256xf32>
    %23 = vector.broadcast %22 : vector<1x256xf32> to vector<8x256xf32>
    %24 = arith.addf %21, %23 : vector<8x256xf32>
    %cst_18 = arith.constant 0.000000e+00 : f32
    %25 = vector.broadcast %cst_18 : f32 to vector<8x256xf32>
    %26 = arith.maximumf %24, %25 : vector<8x256xf32>
    %27 = arith.truncf %26 : vector<8x256xf32> to vector<8x256xbf16>
    %c1_19 = arith.constant 1 : index
    %c0_20 = arith.constant 0 : index
    %c0_21 = arith.constant 0 : index
    %28 = vector.load %arg7[%c1_19, %c0_20, %c0_21] : memref<4x256x128xbf16, #tpu.memory_space<vmem>>, vector<1x256x128xbf16>
    %29 = vector.shape_cast %28 : vector<1x256x128xbf16> to vector<256x128xbf16>
    %cst_22 = arith.constant dense<0.000000e+00> : vector<8x128xf32>
    %30 = tpu.matmul %27, %29, %cst_22 {dimension_numbers = #tpu.dot_dimension_numbers<[1], [0], [0], [1], [0, 0, 1, 1], [], []>} : vector<8x256xbf16>, vector<256x128xbf16>, vector<8x128xf32> -> vector<8x128xf32>
    %c5 = arith.constant 5 : index
    %c0_23 = arith.constant 0 : index
    %31 = vector.load %arg10[%c5, %c0_23] : memref<9x256xf32, #tpu.memory_space<vmem>>, vector<1x128xf32>
    %32 = vector.broadcast %31 : vector<1x128xf32> to vector<8x128xf32>
    %33 = arith.addf %30, %32 : vector<8x128xf32>
    %cst_24 = arith.constant 0.000000e+00 : f32
    %34 = vector.broadcast %cst_24 : f32 to vector<8x128xf32>
    %35 = arith.maximumf %33, %34 : vector<8x128xf32>
    %c0_25 = arith.constant 0 : index
    %c0_26 = arith.constant 0 : index
    %36 = vector.load %arg3[%c0_25, %c0_26] : memref<8x64xf32, #tpu.memory_space<vmem>>, vector<8x64xf32>
    %37 = arith.truncf %36 : vector<8x64xf32> to vector<8x64xbf16>
    %c0_27 = arith.constant 0 : index
    %c0_28 = arith.constant 0 : index
    %38 = vector.load %arg6[%c0_27, %c0_28] : memref<64x256xbf16, #tpu.memory_space<vmem>>, vector<64x256xbf16>
    %cst_29 = arith.constant dense<0.000000e+00> : vector<8x256xf32>
    %39 = tpu.matmul %37, %38, %cst_29 {dimension_numbers = #tpu.dot_dimension_numbers<[1], [0], [0], [1], [0, 0, 1, 1], [], []>} : vector<8x64xbf16>, vector<64x256xbf16>, vector<8x256xf32> -> vector<8x256xf32>
    %c2 = arith.constant 2 : index
    %c0_30 = arith.constant 0 : index
    %40 = vector.load %arg10[%c2, %c0_30] : memref<9x256xf32, #tpu.memory_space<vmem>>, vector<1x256xf32>
    %41 = vector.broadcast %40 : vector<1x256xf32> to vector<8x256xf32>
    %42 = arith.addf %39, %41 : vector<8x256xf32>
    %cst_31 = arith.constant 0.000000e+00 : f32
    %43 = vector.broadcast %cst_31 : f32 to vector<8x256xf32>
    %44 = arith.maximumf %42, %43 : vector<8x256xf32>
    %45 = arith.truncf %44 : vector<8x256xf32> to vector<8x256xbf16>
    %c2_32 = arith.constant 2 : index
    %c0_33 = arith.constant 0 : index
    %c0_34 = arith.constant 0 : index
    %46 = vector.load %arg7[%c2_32, %c0_33, %c0_34] : memref<4x256x128xbf16, #tpu.memory_space<vmem>>, vector<1x256x128xbf16>
    %47 = vector.shape_cast %46 : vector<1x256x128xbf16> to vector<256x128xbf16>
    %cst_35 = arith.constant dense<0.000000e+00> : vector<8x128xf32>
    %48 = tpu.matmul %45, %47, %cst_35 {dimension_numbers = #tpu.dot_dimension_numbers<[1], [0], [0], [1], [0, 0, 1, 1], [], []>} : vector<8x256xbf16>, vector<256x128xbf16>, vector<8x128xf32> -> vector<8x128xf32>
    %c6 = arith.constant 6 : index
    %c0_36 = arith.constant 0 : index
    %49 = vector.load %arg10[%c6, %c0_36] : memref<9x256xf32, #tpu.memory_space<vmem>>, vector<1x128xf32>
    %50 = vector.broadcast %49 : vector<1x128xf32> to vector<8x128xf32>
    %51 = arith.addf %48, %50 : vector<8x128xf32>
    %cst_37 = arith.constant 0.000000e+00 : f32
    %52 = vector.broadcast %cst_37 : f32 to vector<8x128xf32>
    %53 = arith.maximumf %51, %52 : vector<8x128xf32>
    %54 = arith.truncf %17 : vector<8x128xf32> to vector<8x128xbf16>
    %c0_38 = arith.constant 0 : index
    %c0_39 = arith.constant 0 : index
    %c0_40 = arith.constant 0 : index
    %55 = vector.load %arg8[%c0_38, %c0_39, %c0_40] : memref<3x128x256xbf16, #tpu.memory_space<vmem>>, vector<1x128x256xbf16>
    %56 = vector.shape_cast %55 : vector<1x128x256xbf16> to vector<128x256xbf16>
    %cst_41 = arith.constant dense<0.000000e+00> : vector<8x256xf32>
    %57 = tpu.matmul %54, %56, %cst_41 {dimension_numbers = #tpu.dot_dimension_numbers<[1], [0], [0], [1], [0, 0, 1, 1], [], []>} : vector<8x128xbf16>, vector<128x256xbf16>, vector<8x256xf32> -> vector<8x256xf32>
    %58 = arith.truncf %35 : vector<8x128xf32> to vector<8x128xbf16>
    %c1_42 = arith.constant 1 : index
    %c0_43 = arith.constant 0 : index
    %c0_44 = arith.constant 0 : index
    %59 = vector.load %arg8[%c1_42, %c0_43, %c0_44] : memref<3x128x256xbf16, #tpu.memory_space<vmem>>, vector<1x128x256xbf16>
    %60 = vector.shape_cast %59 : vector<1x128x256xbf16> to vector<128x256xbf16>
    %cst_45 = arith.constant dense<0.000000e+00> : vector<8x256xf32>
    %61 = tpu.matmul %58, %60, %cst_45 {dimension_numbers = #tpu.dot_dimension_numbers<[1], [0], [0], [1], [0, 0, 1, 1], [], []>} : vector<8x128xbf16>, vector<128x256xbf16>, vector<8x256xf32> -> vector<8x256xf32>
    %62 = arith.addf %57, %61 : vector<8x256xf32>
    %63 = arith.truncf %53 : vector<8x128xf32> to vector<8x128xbf16>
    %c2_46 = arith.constant 2 : index
    %c0_47 = arith.constant 0 : index
    %c0_48 = arith.constant 0 : index
    %64 = vector.load %arg8[%c2_46, %c0_47, %c0_48] : memref<3x128x256xbf16, #tpu.memory_space<vmem>>, vector<1x128x256xbf16>
    %65 = vector.shape_cast %64 : vector<1x128x256xbf16> to vector<128x256xbf16>
    %cst_49 = arith.constant dense<0.000000e+00> : vector<8x256xf32>
    %66 = tpu.matmul %63, %65, %cst_49 {dimension_numbers = #tpu.dot_dimension_numbers<[1], [0], [0], [1], [0, 0, 1, 1], [], []>} : vector<8x128xbf16>, vector<128x256xbf16>, vector<8x256xf32> -> vector<8x256xf32>
    %67 = arith.addf %62, %66 : vector<8x256xf32>
    %c3 = arith.constant 3 : index
    %c0_50 = arith.constant 0 : index
    %68 = vector.load %arg10[%c3, %c0_50] : memref<9x256xf32, #tpu.memory_space<vmem>>, vector<1x256xf32>
    %69 = vector.broadcast %68 : vector<1x256xf32> to vector<8x256xf32>
    %70 = arith.addf %67, %69 : vector<8x256xf32>
    %cst_51 = arith.constant 0.000000e+00 : f32
    %71 = vector.broadcast %cst_51 : f32 to vector<8x256xf32>
    %72 = arith.maximumf %70, %71 : vector<8x256xf32>
    %73 = arith.truncf %72 : vector<8x256xf32> to vector<8x256xbf16>
    %c3_52 = arith.constant 3 : index
    %c0_53 = arith.constant 0 : index
    %c0_54 = arith.constant 0 : index
    %74 = vector.load %arg7[%c3_52, %c0_53, %c0_54] : memref<4x256x128xbf16, #tpu.memory_space<vmem>>, vector<1x256x128xbf16>
    %75 = vector.shape_cast %74 : vector<1x256x128xbf16> to vector<256x128xbf16>
    %cst_55 = arith.constant dense<0.000000e+00> : vector<8x128xf32>
    %76 = tpu.matmul %73, %75, %cst_55 {dimension_numbers = #tpu.dot_dimension_numbers<[1], [0], [0], [1], [0, 0, 1, 1], [], []>} : vector<8x256xbf16>, vector<256x128xbf16>, vector<8x128xf32> -> vector<8x128xf32>
    %c7 = arith.constant 7 : index
    %c0_56 = arith.constant 0 : index
    %77 = vector.load %arg10[%c7, %c0_56] : memref<9x256xf32, #tpu.memory_space<vmem>>, vector<1x128xf32>
    %78 = vector.broadcast %77 : vector<1x128xf32> to vector<8x128xf32>
    %79 = arith.addf %76, %78 : vector<8x128xf32>
    %cst_57 = arith.constant 0.000000e+00 : f32
    %80 = vector.broadcast %cst_57 : f32 to vector<8x128xf32>
    %81 = arith.maximumf %79, %80 : vector<8x128xf32>
    %82 = arith.truncf %81 : vector<8x128xf32> to vector<8x128xbf16>
    %c0_58 = arith.constant 0 : index
    %c0_59 = arith.constant 0 : index
    %83 = vector.load %arg9[%c0_58, %c0_59] : memref<128x256xbf16, #tpu.memory_space<vmem>>, vector<128x128xbf16>
    %cst_60 = arith.constant dense<0.000000e+00> : vector<8x128xf32>
    %84 = tpu.matmul %82, %83, %cst_60 {dimension_numbers = #tpu.dot_dimension_numbers<[1], [0], [0], [1], [0, 0, 1, 1], [], []>} : vector<8x128xbf16>, vector<128x128xbf16>, vector<8x128xf32> -> vector<8x128xf32>
    %c8 = arith.constant 8 : index
    %c0_61 = arith.constant 0 : index
    %85 = vector.load %arg10[%c8, %c0_61] : memref<9x256xf32, #tpu.memory_space<vmem>>, vector<1x128xf32>
    %86 = vector.broadcast %85 : vector<1x128xf32> to vector<8x128xf32>
    %87 = arith.addf %84, %86 : vector<8x128xf32>
    %88 = vector.extract_strided_slice %87 {offsets = [0, 0], sizes = [8, 1], strides = [1, 1]} : vector<8x128xf32> to vector<8x1xf32>
    %89 = vector.broadcast %88 : vector<8x1xf32> to vector<8x128xf32>
    %90 = arith.mulf %89, %17 : vector<8x128xf32>
    %91 = vector.extract_strided_slice %87 {offsets = [0, 1], sizes = [8, 1], strides = [1, 1]} : vector<8x128xf32> to vector<8x1xf32>
    %92 = vector.broadcast %91 : vector<8x1xf32> to vector<8x128xf32>
    %93 = arith.mulf %92, %35 : vector<8x128xf32>
    %94 = arith.addf %90, %93 : vector<8x128xf32>
    %95 = vector.extract_strided_slice %87 {offsets = [0, 2], sizes = [8, 1], strides = [1, 1]} : vector<8x128xf32> to vector<8x1xf32>
    %96 = vector.broadcast %95 : vector<8x1xf32> to vector<8x128xf32>
    %97 = arith.mulf %96, %53 : vector<8x128xf32>
    %98 = arith.addf %94, %97 : vector<8x128xf32>
    %c0_62 = arith.constant 0 : index
    %c0_63 = arith.constant 0 : index
    %99 = vector.load %arg11[%c0_62, %c0_63] : memref<8x256xf32, #tpu.memory_space<vmem>>, vector<8x128xf32>
    tpu.vector_store %arg11[%c0_62, %c0_63], %98 {strides = array<i32>} : memref<8x256xf32, #tpu.memory_space<vmem>>, vector<8x128xf32>,
    %100 = arith.truncf %98 : vector<8x128xf32> to vector<8x128xbf16>
    %c0_64 = arith.constant 0 : index
    %c128 = arith.constant 128 : index
    %101 = vector.load %arg9[%c0_64, %c128] : memref<128x256xbf16, #tpu.memory_space<vmem>>, vector<128x128xbf16>
    %cst_65 = arith.constant dense<0.000000e+00> : vector<8x128xf32>
    %102 = tpu.matmul %100, %101, %cst_65 {dimension_numbers = #tpu.dot_dimension_numbers<[1], [0], [0], [1], [0, 0, 1, 1], [], []>} : vector<8x128xbf16>, vector<128x128xbf16>, vector<8x128xf32> -> vector<8x128xf32>
    %c8_66 = arith.constant 8 : index
    %c128_67 = arith.constant 128 : index
    %103 = vector.load %arg10[%c8_66, %c128_67] : memref<9x256xf32, #tpu.memory_space<vmem>>, vector<1x128xf32>
    %104 = vector.broadcast %103 : vector<1x128xf32> to vector<8x128xf32>
    %105 = arith.addf %102, %104 : vector<8x128xf32>
    %c0_68 = arith.constant 0 : index
    %c128_69 = arith.constant 128 : index
    %106 = vector.load %arg11[%c0_68, %c128_69] : memref<8x256xf32, #tpu.memory_space<vmem>>, vector<8x128xf32>
    tpu.vector_store %arg11[%c0_68, %c128_69], %105 {strides = array<i32>} : memref<8x256xf32, #tpu.memory_space<vmem>>, vector<8x128xf32>,
    return
  }
  func.func @transform_0(%arg0: i32) -> (i32, i32) {
    %c0_i32 = arith.constant 0 : i32
    %c0_i32_0 = arith.constant 0 : i32
    return %arg0, %c0_i32 : i32, i32
  }
  func.func @transform_1(%arg0: i32) -> (i32, i32) {
    %c0_i32 = arith.constant 0 : i32
    %c0_i32_0 = arith.constant 0 : i32
    return %arg0, %c0_i32 : i32, i32
  }
  func.func @transform_2(%arg0: i32) -> (i32, i32) {
    %c0_i32 = arith.constant 0 : i32
    %c0_i32_0 = arith.constant 0 : i32
    return %arg0, %c0_i32 : i32, i32
  }
  func.func @transform_3(%arg0: i32) -> (i32, i32) {
    %c0_i32 = arith.constant 0 : i32
    %c0_i32_0 = arith.constant 0 : i32
    %c0_i32_1 = arith.constant 0 : i32
    return %c0_i32, %c0_i32_0 : i32, i32
  }
  func.func @transform_4(%arg0: i32) -> (i32, i32) {
    %c0_i32 = arith.constant 0 : i32
    %c0_i32_0 = arith.constant 0 : i32
    %c0_i32_1 = arith.constant 0 : i32
    return %c0_i32, %c0_i32_0 : i32, i32
  }
  func.func @transform_5(%arg0: i32) -> (i32, i32) {
    %c0_i32 = arith.constant 0 : i32
    %c0_i32_0 = arith.constant 0 : i32
    %c0_i32_1 = arith.constant 0 : i32
    return %c0_i32, %c0_i32_0 : i32, i32
  }
  func.func @transform_6(%arg0: i32) -> (i32, i32, i32) {
    %c0_i32 = arith.constant 0 : i32
    %c0_i32_0 = arith.constant 0 : i32
    %c0_i32_1 = arith.constant 0 : i32
    %c0_i32_2 = arith.constant 0 : i32
    return %c0_i32, %c0_i32_0, %c0_i32_1 : i32, i32, i32
  }
  func.func @transform_7(%arg0: i32) -> (i32, i32, i32) {
    %c0_i32 = arith.constant 0 : i32
    %c0_i32_0 = arith.constant 0 : i32
    %c0_i32_1 = arith.constant 0 : i32
    %c0_i32_2 = arith.constant 0 : i32
    return %c0_i32, %c0_i32_0, %c0_i32_1 : i32, i32, i32
  }
  func.func @transform_8(%arg0: i32) -> (i32, i32) {
    %c0_i32 = arith.constant 0 : i32
    %c0_i32_0 = arith.constant 0 : i32
    %c0_i32_1 = arith.constant 0 : i32
    return %c0_i32, %c0_i32_0 : i32, i32
  }
  func.func @transform_9(%arg0: i32) -> (i32, i32) {
    %c0_i32 = arith.constant 0 : i32
    %c0_i32_0 = arith.constant 0 : i32
    %c0_i32_1 = arith.constant 0 : i32
    return %c0_i32, %c0_i32_0 : i32, i32
  }
  func.func @transform_10(%arg0: i32) -> (i32, i32) {
    %c0_i32 = arith.constant 0 : i32
    %c0_i32_0 = arith.constant 0 : i32
    return %arg0, %c0_i32 : i32, i32
  }
}

</mosaic_0001>

<bundles_post_ra>
// kernel: _lambda_.1
= control target key start
LH: loop header
LB: loop body
LE: loop exit
PB: predicated region body
PF: predicated region fallthrough
CT: control target
= control target key end

     0   :  { %15 = vsyncpa [#allocation3], 0  ;;  %s2647_s0 = inlined_call_operand.vmem [shape: f32[8,32], index: 0, kind: input, shape index: {}]   ;;  %s2648_s1 = inlined_call_operand.vmem [shape: f32[8,48], index: 1, kind: input, shape index: {}]   ;;  %s2649_s2 = inlined_call_operand.hbm [shape: f32[8,64], index: 2, kind: input, shape index: {}]   ;;  %s2650_s3 = inlined_call_operand.hbm [shape: bf16[32,256], index: 3, kind: input, shape index: {}]   ;;  %s2651_s4 = inlined_call_operand.hbm [shape: bf16[48,256], index: 4, kind: input, shape index: {}]   ;;  %s2652_s5 = inlined_call_operand.hbm [shape: bf16[64,256], index: 5, kind: input, shape index: {}]   ;;  %s2653_s6 = inlined_call_operand.hbm [shape: bf16[4,256,128], index: 6, kind: input, shape index: {}]   ;;  %s2654_s7 = inlined_call_operand.hbm [shape: bf16[3,128,256], index: 7, kind: input, shape index: {}]   ;;  %s2655_s8 = inlined_call_operand.hbm [shape: bf16[128,256], index: 8, kind: input, shape index: {}]   ;;  %s2656_s9 = inlined_call_operand.hbm [shape: f32[9,256], index: 9, kind: input, shape index: {}]   ;;  %s2657_s10 = inlined_call_operand.vmem [shape: f32[8,256], index: 10, kind: output, shape index: {}]  }
   0x1   :  { %16 = vsyncpa [#allocation5], 0 }
   0x2   :  { %17 = vsyncpa [#allocation8], 0 }
   0x3   :  { %18 = vsyncpa [#allocation11], 0 }
   0x4   :  { %19 = vsyncpa [#allocation14], 0  ;;  %s2470_s13 = smov [#allocation4]  }
   0x5   :  { %s39_s14 = sshll.u32 %s2470_s13, 4  ;;  %s40_s14 = int_to_ptr.vmem [resolvable:$true] %s39_s14 }
   0x6   :  { %s2308_s15 = scalar_lea.vmem %s40_s14, 512  ;;  %p2313_p1 = scmp.lt.s32.totalorder %s40_s14, %s40_s14 }
   0x7   :  { %p2309_p0 = scmp.ne.s32.totalorder %s40_s14, %s2308_s15  ;;  %p2314_p2 = scmp.lt.s32.totalorder %s2308_s15, %s2308_s15 }
   0x9   :  { %p2315_p3 = por %p2314_p2, %p2313_p1 }
   0xb   :  { %p2316_p4 = pnand %p2315_p3, %p2309_p0 }
   0xd   :  { %2319 = shalt.err (!%p2316_p4)
}
   0xe   :  { %s2471_s16 = smov 128   ;;  %s2472_s17 = smov 8  }
   0xf   :  { %45 = dma.hbm_to_vmem [thread:$0]  %s2650_s3, 512, %s40_s14, [#allocation5], %s2471_s16, %s2471_s16, %s2472_s17  }
  0x10   :  { %s2473_s20 = smov [#allocation7]   ;;  %s2474_s22 = smov [#allocation10]  }
  0x11   :  { %s63_s21 = sshll.u32 %s2473_s20, 4  ;;  %s87_s23 = sshll.u32 %s2474_s22, 4  ;;  %s64_s21 = int_to_ptr.vmem [resolvable:$true] %s63_s21  ;;  %s88_s23 = int_to_ptr.vmem [resolvable:$true] %s87_s23 }
  0x12   :  { %s2328_s24 = scalar_lea.vmem %s64_s21, 1024  ;;  %p2333_p6 = scmp.lt.s32.totalorder %s64_s21, %s64_s21 }
  0x13   :  { %p2329_p5 = scmp.ne.s32.totalorder %s64_s21, %s2328_s24  ;;  %p2334_p7 = scmp.lt.s32.totalorder %s2328_s24, %s2328_s24 }
  0x15   :  { %p2335_p8 = por %p2334_p7, %p2333_p6 }
  0x17   :  { %p2336_p9 = pnand %p2335_p8, %p2329_p5 }
  0x19   :  { %2339 = shalt.err (!%p2336_p9)
}
  0x1a   :  { %69 = dma.hbm_to_vmem [thread:$0]  %s2652_s5, 1024, %s64_s21, [#allocation8], %s2471_s16, %s2471_s16, %s2472_s17  }
  0x1b   :  { %s2348_s3 = scalar_lea.vmem %s88_s23, 6144  ;;  %p2353_p11 = scmp.lt.s32.totalorder %s88_s23, %s88_s23 }
  0x1c   :  { %p2349_p10 = scmp.ne.s32.totalorder %s88_s23, %s2348_s3  ;;  %p2354_p12 = scmp.lt.s32.totalorder %s2348_s3, %s2348_s3 }
  0x1e   :  { %p2355_p13 = por %p2354_p12, %p2353_p11 }
  0x20   :  { %p2356_p0 = pnand %p2355_p13, %p2349_p10 }
  0x22   :  { %2359 = shalt.err (!%p2356_p0)
}
  0x23   :  { %93 = dma.hbm_to_vmem [thread:$0]  %s2654_s7, 6144, %s88_s23, [#allocation11], %s2471_s16, %s2471_s16, %s2472_s17  }
  0x24   :  { %s2475_s29 = smov [#allocation2]   ;;  %s2476_s11 = smov [#allocation6]  }
  0x25   :  { %s30_s30 = sshll.u32 %s2475_s29, 4  ;;  %s51_s5 = sshll.u32 %s2476_s11, 4  ;;  %s31_s30 = int_to_ptr.vmem [resolvable:$true] %s30_s30  ;;  %s52_s5 = int_to_ptr.vmem [resolvable:$true] %s51_s5 }
  0x26   :  { %s2368_s12 = scalar_lea.vmem %s31_s30, 128  ;;  %p2373_p2 = scmp.lt.s32.totalorder %s31_s30, %s31_s30 }
  0x27   :  { %p2369_p1 = scmp.ne.s32.totalorder %s31_s30, %s2368_s12  ;;  %p2374_p3 = scmp.lt.s32.totalorder %s2368_s12, %s2368_s12 }
  0x29   :  { %p2375_p4 = por %p2374_p3, %p2373_p2 }
  0x2b   :  { %p2376_p5 = pnand %p2375_p4, %p2369_p1 }
  0x2d   :  { %2379 = shalt.err (!%p2376_p5)
}
  0x2e   :  { %33 = dma.hbm_to_vmem [thread:$0]  %s2649_s2, 128, %s31_s30, [#allocation3]  }
  0x2f   :  { %s2388_s15 = scalar_lea.vmem %s52_s5, 768  ;;  %p2393_p7 = scmp.lt.s32.totalorder %s52_s5, %s52_s5 }
  0x30   :  { %p2389_p6 = scmp.ne.s32.totalorder %s52_s5, %s2388_s15  ;;  %p2394_p8 = scmp.lt.s32.totalorder %s2388_s15, %s2388_s15 }
  0x32   :  { %p2395_p9 = por %p2394_p8, %p2393_p7 }
  0x34   :  { %p2396_p10 = pnand %p2395_p9, %p2389_p6 }
  0x36   :  { %2399 = shalt.err (!%p2396_p10)
}
  0x37   :  { %57 = dma.hbm_to_vmem [thread:$0]  %s2651_s4, 768, %s52_s5, [#allocation5], %s2471_s16, %s2471_s16, %s2472_s17  }
  0x38   :  { %s2477_s19 = smov [#allocation9]  }
  0x39   :  { %s75_s20 = sshll.u32 %s2477_s19, 4  ;;  %s76_s20 = int_to_ptr.vmem [resolvable:$true] %s75_s20 }
  0x3a   :  { %s2408_s21 = scalar_lea.vmem %s76_s20, 8192  ;;  %p2413_p12 = scmp.lt.s32.totalorder %s76_s20, %s76_s20 }
  0x3b   :  { %p2409_p11 = scmp.ne.s32.totalorder %s76_s20, %s2408_s21  ;;  %p2414_p13 = scmp.lt.s32.totalorder %s2408_s21, %s2408_s21 }
  0x3d   :  { %p2415_p0 = por %p2414_p13, %p2413_p12 }
  0x3f   :  { %p2416_p1 = pnand %p2415_p0, %p2409_p11 }
  0x41   :  { %2419 = shalt.err (!%p2416_p1)
}
  0x42   :  { %s2478_s2 = smov 64   ;;  %s2479_s22 = smov 4  }
  0x43   :  { %81 = dma.hbm_to_vmem [thread:$0]  %s2653_s6, 8192, %s76_s20, [#allocation8], %s2478_s2, %s2478_s2, %s2479_s22  }
  0x44   :  { %s2480_s25 = smov [#allocation12]   ;;  %s2481_s3 = smov [#allocation13]  }
  0x45   :  { %s99_s26 = sshll.u32 %s2480_s25, 4  ;;  %s111_s4 = sshll.u32 %s2481_s3, 4  ;;  %s100_s26 = int_to_ptr.vmem [resolvable:$true] %s99_s26  ;;  %s112_s4 = int_to_ptr.vmem [resolvable:$true] %s111_s4 }
  0x46   :  { %s2428_s27 = scalar_lea.vmem %s100_s26, 2048  ;;  %p2433_p3 = scmp.lt.s32.totalorder %s100_s26, %s100_s26 }
  0x47   :  { %p2429_p2 = scmp.ne.s32.totalorder %s100_s26, %s2428_s27  ;;  %p2434_p4 = scmp.lt.s32.totalorder %s2428_s27, %s2428_s27 }
  0x49   :  { %p2435_p5 = por %p2434_p4, %p2433_p3 }
  0x4b   :  { %p2436_p6 = pnand %p2435_p5, %p2429_p2 }
  0x4d   :  { %2439 = shalt.err (!%p2436_p6)
}
  0x4e   :  { %105 = dma.hbm_to_vmem [thread:$0]  %s2655_s8, 2048, %s100_s26, [#allocation11], %s2471_s16, %s2471_s16, %s2472_s17  }
  0x4f   :  { %s2448_s6 = scalar_lea.vmem %s112_s4, 512  ;;  %p2453_p8 = scmp.lt.s32.totalorder %s112_s4, %s112_s4 }
  0x50   :  { %p2449_p7 = scmp.ne.s32.totalorder %s112_s4, %s2448_s6  ;;  %p2454_p9 = scmp.lt.s32.totalorder %s2448_s6, %s2448_s6 }
  0x52   :  { %p2455_p10 = por %p2454_p9, %p2453_p8 }
  0x54   :  { %p2456_p11 = pnand %p2455_p10, %p2449_p7 }
  0x56   :  { %2459 = shalt.err (!%p2456_p11)
}
  0x57   :  { %s2482_s30 = smov 256   ;;  %s2483_s11 = smov 16  }
  0x58   :  { %117 = dma.hbm_to_vmem [thread:$0]  %s2656_s9, 512, %s112_s4, [#allocation14], %s2482_s30, %s2482_s30, %s2483_s11  }
  0x59   :  { %2460 = dma.done.wait [#allocation3], 128  }
  0x5a   :  { %2461 = vsyncadd [#allocation3], 4294967168 }
  0x5b   :  { %2462 = dma.done.wait [#allocation5], 1280  }
  0x5c   :  { %2463 = vsyncadd [#allocation5], 4294966016 }
  0x5d   :  { %2464 = dma.done.wait [#allocation8], 9216  }
  0x5e   :  { %2465 = vsyncadd [#allocation8], 4294958080 }
  0x5f   :  { %2466 = dma.done.wait [#allocation11], 8192  }
  0x60   :  { %2467 = vsyncadd [#allocation11], 4294959104 }
  0x61   :  { %2468 = dma.done.wait [#allocation14], 512  }
  0x62   :  { %2469 = vsyncadd [#allocation14], 4294966784  ;;  %v2484_v0 = vmov 0   ;;  %v2121_v1 = vld [vmem:[#allocation4 + $0x14] ss:$8 sps:$4 sm:$0xff]   ;;  %vm181_vm0 = vcmask 261120   ;;  %v151_v48 = vlaneseq }
  0x63   :  { %217 = vmatprep.mubr.bf16.mxu0 %v2484_v0  ;;  %2117 = vset.pattern.permute.xlu0 %v2484_v0  ;;  %v2123_v2 = vld [vmem:[#allocation4 + $0x10] ss:$8 sps:$4 sm:$0xff]   ;;  %v2124_v3 = vld [vmem:[#allocation4 + $0x4] ss:$8 sps:$4 sm:$0xff]   ;;  %v2126_v4 = vld [vmem:[#allocation4] ss:$8 sps:$4 sm:$0xff]  }
  0x64   :  { %197 = vmatprep.subr.bf16.mxu0 %v2121_v1  ;;  %v143_v5 = vld [vmem:[%s2647_s0] sm:$0xff]  ;;  %v2129_v6 = vld [vmem:[#allocation6 + $0x24] ss:$8 sps:$4 sm:$0xff]   ;;  %v2127_v8 = vld [vmem:[#allocation6 + $0x20] ss:$8 sps:$4 sm:$0xff]   ;;  %vm451_vm1 = vcmask 392192  }
  0x65   :  { %198 = vmatpush1.bf16.msra.mxu0 %v2123_v2  ;;  %v144_v7 = vpack.c.bf16 %v143_v5, %v143_v5  ;;  %v2132_v9 = vld [vmem:[#allocation6 + $0x14] ss:$8 sps:$4 sm:$0xff]   ;;  %v2136_v10 = vld [vmem:[#allocation9 + $0x78] sm:$0xff]   ;;  %v2130_v11 = vld [vmem:[#allocation6 + $0x10] ss:$8 sps:$4 sm:$0xff]   ;;  %v152_v49 = vshrl.u32 %v151_v48, 7 }
  0x66   :  { %199 = vmatprep.subr.bf16.mxu0 %v2124_v3  ;;  %v2137_v12 = vld [vmem:[#allocation9 + $0x38] sm:$0xff]   ;;  %1952 = vmatprep.subr.bf16.mxu1 %v2136_v10  ;;  %v2138_v13 = vld [vmem:[#allocation9 + $0x70] sm:$0xff]   ;;  %v2140_v17 = vld [vmem:[#allocation9 + $0x68] sm:$0xff]   ;;  %vm734_vm2 = vcmask 523264   ;;  %vm2486_vm3 = vmmov 0  }
  0x67   :  { %v2135_v14 = vld [vmem:[#allocation6 + $0x4] ss:$8 sps:$4 sm:$0xff]   ;;  %1953 = vmatpush3.bf16.msra.mxu1 %v2137_v12  ;;  %v2133_v16 = vld [vmem:[#allocation6] ss:$8 sps:$4 sm:$0xff]   ;;  %v400_v18 = vld [vmem:[%s2648_s1] sm:$0xff]  ;;  %v2592_v50 = vsub.s32 0, %v152_v49 }
  0x68   :  { %v2139_v15 = vld [vmem:[#allocation9 + $0x30] sm:$0xff]   ;;  %1954 = vmatprep.subr.bf16.mxu1 %v2138_v13  ;;  %v2141_v19 = vld [vmem:[#allocation9 + $0x28] sm:$0xff]   ;;  %v2142_v20 = vld [vmem:[#allocation9 + $0xf8] sm:$0xff]   ;;  %v401_v22 = vpack.c.bf16 %v400_v18, %v400_v18  ;;  %v2594_v52 = vsub.s32 1, %v152_v49 }
  0x69   :  { %200 = vmatpush1.bf16.msra.mxu0 %v2126_v4  ;;  %v2143_v21 = vld [vmem:[#allocation9 + $0x60] sm:$0xff]   ;;  %v2144_v23 = vld [vmem:[#allocation9 + $0xb8] sm:$0xff]   ;;  %v2146_v25 = vld [vmem:[#allocation9 + $0xf0] sm:$0xff]  }
  0x6a   :  { %465 = vmatprep.subr.bf16.mxu0 %v2129_v6  ;;  %v2145_v24 = vld [vmem:[#allocation9 + $0x20] sm:$0xff]   ;;  %v2147_v26 = vld [vmem:[#allocation9 + $0x58] sm:$0xff]   ;;  %v2148_v27 = vld [vmem:[#allocation9 + $0xb0] sm:$0xff]  }
  0x6b   :  { %1955 = vmatpush3.bf16.msra.mxu1 %v2139_v15  ;;  %v2149_v28 = vld [vmem:[#allocation9 + $0x18] sm:$0xff]   ;;  %v2150_v29 = vld [vmem:[#allocation9 + $0xe8] sm:$0xff]   ;;  %v2151_v30 = vld [vmem:[#allocation9 + $0x50] sm:$0xff]  }
  0x6c   :  { %1807 = vmatmul.mubr.msk.bf16.vlgmr.msra.gmra.mxu0 %vm181_vm0, %v144_v7  ;;  %1956 = vmatprep.subr.bf16.mxu1 %v2140_v17  ;;  %v2152_v31 = vld [vmem:[#allocation9 + $0xa8] sm:$0xff]   ;;  %v2153_v32 = vld [vmem:[#allocation9 + $0x10] sm:$0xff]   ;;  %v2154_v33 = vld [vmem:[#allocation9 + $0xe0] sm:$0xff]  }
  0x6d   :  { %466 = vmatpush1.bf16.msra.mxu0 %v2127_v8  ;;  %487 = vmatprep.mubr.bf16.mxu0 %v2484_v0  ;;  %v2155_v34 = vld [vmem:[#allocation9 + $0x48] sm:$0xff]   ;;  %v2156_v35 = vld [vmem:[#allocation9 + $0xa0] sm:$0xff]   ;;  %v2158_v37 = vld [vmem:[#allocation9 + $0xd8] sm:$0xff]  }
  0x6e   :  { %467 = vmatprep.subr.bf16.mxu0 %v2132_v9  ;;  %v2157_v36 = vld [vmem:[#allocation9 + $0x8] sm:$0xff]   ;;  %v2159_v38 = vld [vmem:[#allocation9 + $0x40] sm:$0xff]   ;;  %v2160_v39 = vld [vmem:[#allocation9 + $0x98] sm:$0xff]  }
  0x6f   :  { %1957 = vmatpush3.bf16.msra.mxu1 %v2141_v19  ;;  %v2161_v40 = vld [vmem:[#allocation9] sm:$0xff]   ;;  %v2162_v41 = vld [vmem:[#allocation9 + $0xd0] sm:$0xff]   ;;  %v2164_v43 = vld [vmem:[#allocation9 + $0xc8] sm:$0xff]  }
  0x70   :  { %1958 = vmatprep.subr.bf16.mxu1 %v2143_v21  ;;  %v2163_v42 = vld [vmem:[#allocation9 + $0x90] sm:$0xff]   ;;  %v2165_v44 = vld [vmem:[#allocation9 + $0x88] sm:$0xff]   ;;  %v2166_v45 = vld [vmem:[#allocation9 + $0xc0] sm:$0xff]  }
  0x71   :  { %468 = vmatpush1.bf16.msra.mxu0 %v2130_v11  ;;  %v2167_v46 = vld [vmem:[#allocation9 + $0x80] sm:$0xff]   ;;  %v2170_v47 = vld [vmem:[#allocation7 + $0x34] ss:$8 sps:$4 sm:$0xff]   ;;  %v2174_v19 = vld [vmem:[#allocation7 + $0x10] ss:$8 sps:$4 sm:$0xff]  }
  0x72   :  { %469 = vmatprep.subr.bf16.mxu0 %v2135_v14  ;;  %v149_v51 = vld [vmem:[#allocation13] ss:$8 sm:$0x3]  ;;  %v409_v63 = vld [vmem:[#allocation13 + $0x1] ss:$8 sm:$0x3] }
  0x73   :  { %1959 = vmatpush3.bf16.msra.mxu1 %v2145_v24  ;;  %v154_v53 = vrot.slane %v149_v51, %v2592_v50  ;;  %v158_v54 = vrot.slane %v149_v51, %v2594_v52  ;;  %v414_v3 = vrot.slane %v409_v63, %v2592_v50  ;;  %v418_v4 = vrot.slane %v409_v63, %v2594_v52  ;;  %v2168_v14 = vld [vmem:[#allocation7 + $0x30] ss:$8 sps:$4 sm:$0xff]   ;;  %v2171_v17 = vld [vmem:[#allocation7 + $0x20] ss:$8 sps:$4 sm:$0xff]   ;;  %v2176_v18 = vld [vmem:[#allocation7 + $0x14] ss:$8 sps:$4 sm:$0xff]  }
  0x74   :  { %1960 = vmatprep.subr.bf16.mxu1 %v2147_v26  ;;  %v2177_v21 = vld [vmem:[#allocation7] ss:$8 sps:$4 sm:$0xff]   ;;  %v2185_v26 = vld [vmem:[#allocation10 + $0xe4] ss:$8 sps:$4 sm:$0xff]   ;;  %v2212_v48 = vld [vmem:[#allocation9 + $0x158] sm:$0xff]  }
  0x75   :  { %470 = vmatpush1.bf16.msra.mxu0 %v2133_v16  ;;  %v2173_v16 = vld [vmem:[#allocation7 + $0x24] ss:$8 sps:$4 sm:$0xff]   ;;  %v2213_v49 = vld [vmem:[#allocation9 + $0x118] sm:$0xff]   ;;  %v2214_v51 = vld [vmem:[#allocation9 + $0x150] sm:$0xff]  }
  0x76   :  { %1974 = vmatprep.subr.bf16.mxu0 %v2142_v20  ;;  %v2179_v20 = vld [vmem:[#allocation7 + $0x4] ss:$8 sps:$4 sm:$0xff]  }
  0x77   :  { %1961 = vmatpush3.bf16.msra.mxu1 %v2149_v28  ;;  %v2188_v28 = vld [vmem:[#allocation10 + $0xd4] ss:$8 sps:$4 sm:$0xff]  }
  0x78   :  { %1830 = vmatmul.mubr.msk.bf16.vlgmr.msra.gmra.mxu0 %vm451_vm1, %v401_v22  ;;  %1962 = vmatprep.subr.bf16.mxu1 %v2151_v30  ;;  %v671_v22 = vld [vmem:[#allocation2] sm:$0xff] }
  0x79   :  { %1975 = vmatpush3.bf16.msra.mxu0 %v2144_v23  ;;  %v2182_v23 = vld [vmem:[#allocation10 + $0xf4] ss:$8 sps:$4 sm:$0xff]   ;;  %v672_v24 = vpack.c.bf16 %v671_v22, %v671_v22  ;;  %v2191_v30 = vld [vmem:[#allocation10 + $0xc4] ss:$8 sps:$4 sm:$0xff]  }
  0x7a   :  { %1976 = vmatprep.subr.bf16.mxu0 %v2146_v25  ;;  %v2180_v25 = vld [vmem:[#allocation10 + $0xf0] ss:$8 sps:$4 sm:$0xff]  }
  0x7b   :  { %1963 = vmatpush3.bf16.msra.mxu1 %v2153_v32  ;;  %v2192_v32 = vld [vmem:[#allocation9 + $0x178] sm:$0xff]  }
  0x7c   :  { %1964 = vmatprep.subr.bf16.mxu1 %v2155_v34  ;;  %v2196_v34 = vld [vmem:[#allocation10 + $0xb4] ss:$8 sps:$4 sm:$0xff]  }
  0x7d   :  { %1977 = vmatpush3.bf16.msra.mxu0 %v2148_v27  ;;  %v2183_v27 = vld [vmem:[#allocation10 + $0xe0] ss:$8 sps:$4 sm:$0xff]  }
  0x7e   :  { %1978 = vmatprep.subr.bf16.mxu0 %v2150_v29  ;;  %v2186_v29 = vld [vmem:[#allocation10 + $0xd0] ss:$8 sps:$4 sm:$0xff]  }
  0x7f   :  { %1965 = vmatpush3.bf16.msra.mxu1 %v2157_v36  ;;  %v2197_v36 = vld [vmem:[#allocation9 + $0x170] sm:$0xff]  }
  0x80   :  { %1966 = vmatprep.subr.bf16.mxu1 %v2159_v38  ;;  %v2199_v38 = vld [vmem:[#allocation10 + $0xa0] ss:$8 sps:$4 sm:$0xff]  }
  0x81   :  { %1979 = vmatpush3.bf16.msra.mxu0 %v2152_v31  ;;  %v2189_v31 = vld [vmem:[#allocation10 + $0xc0] ss:$8 sps:$4 sm:$0xff]  }
  0x82   :  { %1980 = vmatprep.subr.bf16.mxu0 %v2154_v33  ;;  %v2193_v33 = vld [vmem:[#allocation9 + $0x138] sm:$0xff]  }
  0x83   :  { %1967 = vmatpush3.bf16.msra.mxu1 %v2161_v40  ;;  %v2202_v40 = vld [vmem:[#allocation9 + $0x168] sm:$0xff]  }
  0x84   :  { %1996 = vmatprep.subr.bf16.mxu1 %v2192_v32  ;;  %v2229_v32 = vld [vmem:[#allocation10 + $0x40] ss:$8 sps:$4 sm:$0xff]  }
  0x85   :  { %1981 = vmatpush3.bf16.msra.mxu0 %v2156_v35  ;;  %v2194_v35 = vld [vmem:[#allocation10 + $0xb0] ss:$8 sps:$4 sm:$0xff]  }
  0x86   :  { %1982 = vmatprep.subr.bf16.mxu0 %v2158_v37  ;;  %v2198_v37 = vld [vmem:[#allocation9 + $0x130] sm:$0xff]  }
  0x89   :  { %1983 = vmatpush3.bf16.msra.mxu0 %v2160_v39  ;;  %v2201_v39 = vld [vmem:[#allocation10 + $0xa4] ss:$8 sps:$4 sm:$0xff]  }
  0x8a   :  { %1984 = vmatprep.subr.bf16.mxu0 %v2162_v41  ;;  %v2203_v41 = vld [vmem:[#allocation9 + $0x128] sm:$0xff]  }
  0x8d   :  { %1985 = vmatpush3.bf16.msra.mxu0 %v2163_v42  ;;  %v2206_v42 = vld [vmem:[#allocation10 + $0x94] ss:$8 sps:$4 sm:$0xff]  }
  0x8e   :  { %1986 = vmatprep.subr.bf16.mxu0 %v2164_v43  ;;  %v2204_v43 = vld [vmem:[#allocation10 + $0x90] ss:$8 sps:$4 sm:$0xff]  }
  0x91   :  { %1987 = vmatpush3.bf16.msra.mxu0 %v2165_v44  ;;  %v2207_v44 = vld [vmem:[#allocation9 + $0x160] sm:$0xff]  }
  0x92   :  { %1988 = vmatprep.subr.bf16.mxu0 %v2166_v45  ;;  %v2208_v45 = vld [vmem:[#allocation9 + $0x120] sm:$0xff]  }
  0x95   :  { %1989 = vmatpush3.bf16.msra.mxu0 %v2167_v46  ;;  %v2211_v46 = vld [vmem:[#allocation10 + $0x84] ss:$8 sps:$4 sm:$0xff]  }
  0x96   :  { %746 = vmatprep.subr.bf16.mxu0 %v2170_v47  ;;  %v2209_v47 = vld [vmem:[#allocation10 + $0x80] ss:$8 sps:$4 sm:$0xff]  }
 0x12c   :  { %v219_v55 = vpop.f32.mrf.mxu0 }
 0x12d   :  { %v220_v56 = vadd.f32 %v219_v55, %v154_v53  ;;  %v2215_v53 = vld [vmem:[#allocation9 + $0x110] sm:$0xff]   ;;  %v2217_v55 = vld [vmem:[#allocation9 + $0x108] sm:$0xff]  }
 0x12e   :  { %v221_v57 = vpop.f32.mrf.mxu0 }
 0x12f   :  { %v222_v58 = vadd.f32 %v221_v57, %v158_v54  ;;  %v226_v59 = vmax.f32 %v220_v56, 0.0  ;;  %v2216_v54 = vld [vmem:[#allocation9 + $0x148] sm:$0xff]   ;;  %v2218_v56 = vld [vmem:[#allocation9 + $0x140] sm:$0xff]  }
 0x130   :  { %v223_v60 = vpop.f32.mrf.mxu0  ;;  %v2219_v57 = vld [vmem:[#allocation9 + $0x100] sm:$0xff]  }
 0x131   :  { %v227_v61 = vmax.f32 %v222_v58, 0.0  ;;  %v228_v2 = vpack.c.bf16 %v226_v59, %v226_v59  ;;  %v2222_v58 = vld [vmem:[#allocation10 + $0x74] ss:$8 sps:$4 sm:$0xff]  }
 0x132   :  { %v224_v62 = vpop.f32.mrf.mxu0  ;;  %v2246_v59 = vld [vmem:[#allocation10 + $0x174] ss:$8 sps:$4 sm:$0xff]  }
 0x133   :  { %v229_v1 = vpack.c.bf16 %v227_v61, %v227_v61 }
 0x135   :  { %391 = vmatprep.mubr.bf16.mxu1 %v229_v1 }
 0x136   :  { %392 = vmatmul.mubr.bf16.vlgmr.msra.gmra.mxu1 %v228_v2  ;;  %v533_v2 = vld [vmem:[#allocation13 + $0x5] ss:$0 sm:$0xff] }
 0x137   :  { %1997 = vmatpush3.bf16.msra.mxu1 %v2193_v33  ;;  %v2234_v33 = vld [vmem:[#allocation10 + $0x34] ss:$8 sps:$4 sm:$0xff]  }
 0x138   :  { %v489_v5 = vpop.f32.mrf.mxu0  ;;  %1998 = vmatprep.subr.bf16.mxu1 %v2197_v36  ;;  %v2235_v36 = vld [vmem:[#allocation10 + $0x20] ss:$8 sps:$4 sm:$0xff]  }
 0x139   :  { %v490_v6 = vadd.f32 %v489_v5, %v414_v3 }
 0x13a   :  { %v491_v7 = vpop.f32.mrf.mxu0 }
 0x13b   :  { %v492_v8 = vadd.f32 %v491_v7, %v418_v4  ;;  %v496_v9 = vmax.f32 %v490_v6, 0.0  ;;  %1999 = vmatpush3.bf16.msra.mxu1 %v2198_v37 }
 0x13c   :  { %v493_v10 = vpop.f32.mrf.mxu0  ;;  %2000 = vmatprep.subr.bf16.mxu1 %v2202_v40 }
 0x13d   :  { %v497_v11 = vmax.f32 %v492_v8, 0.0  ;;  %v498_v15 = vpack.c.bf16 %v496_v9, %v496_v9  ;;  %v2244_v9 = vld [vmem:[#allocation10 + $0x170] ss:$8 sps:$4 sm:$0xff]  }
 0x13e   :  { %v494_v12 = vpop.f32.mrf.mxu0 }
 0x13f   :  { %v499_v13 = vpack.c.bf16 %v497_v11, %v497_v11  ;;  %2001 = vmatpush3.bf16.msra.mxu1 %v2203_v41  ;;  %v2249_v11 = vld [vmem:[#allocation10 + $0x164] ss:$8 sps:$4 sm:$0xff]   ;;  %v682_v12 = vld [vmem:[#allocation13 + $0x2] ss:$8 sm:$0x3] }
 0x140   :  { %2002 = vmatprep.subr.bf16.mxu1 %v2207_v44  ;;  %v2243_v41 = vld [vmem:[#allocation10 + $0x4] ss:$8 sps:$4 sm:$0xff]  }
 0x141   :  { %662 = vmatprep.mubr.bf16.mxu0 %v499_v13  ;;  %v2247_v13 = vld [vmem:[#allocation10 + $0x160] ss:$8 sps:$4 sm:$0xff]  }
 0x142   :  { %663 = vmatmul.mubr.bf16.vlgmr.msra.gmra.mxu0 %v498_v15  ;;  %v691_v15 = vrot.slane %v682_v12, %v2594_v52 }
 0x143   :  { %747 = vmatpush1.bf16.msra.mxu0 %v2168_v14  ;;  %770 = vmatprep.mubr.bf16.mxu0 %v2484_v0  ;;  %v687_v14 = vrot.slane %v682_v12, %v2592_v50  ;;  %v816_v12 = vld [vmem:[#allocation13 + $0x6] ss:$0 sm:$0xff] }
 0x144   :  { %748 = vmatprep.subr.bf16.mxu0 %v2173_v16  ;;  %2003 = vmatpush3.bf16.msra.mxu1 %v2208_v45  ;;  %v2250_v45 = vld [vmem:[#allocation10 + $0x150] ss:$8 sps:$4 sm:$0xff]  }
 0x145   :  { %2004 = vmatprep.subr.bf16.mxu1 %v2212_v48  ;;  %v2255_v48 = vld [vmem:[#allocation10 + $0x144] ss:$8 sps:$4 sm:$0xff]  }
 0x147   :  { %749 = vmatpush1.bf16.msra.mxu0 %v2171_v17 }
 0x148   :  { %750 = vmatprep.subr.bf16.mxu0 %v2176_v18  ;;  %2005 = vmatpush3.bf16.msra.mxu1 %v2213_v49  ;;  %v2258_v49 = vld [vmem:[#allocation10 + $0x134] ss:$8 sps:$4 sm:$0xff]  }
 0x149   :  { %2006 = vmatprep.subr.bf16.mxu1 %v2214_v51  ;;  %v2256_v51 = vld [vmem:[#allocation10 + $0x130] ss:$8 sps:$4 sm:$0xff]  }
 0x14b   :  { %751 = vmatpush1.bf16.msra.mxu0 %v2174_v19 }
 0x14c   :  { %752 = vmatprep.subr.bf16.mxu0 %v2179_v20  ;;  %2007 = vmatpush3.bf16.msra.mxu1 %v2215_v53  ;;  %v2261_v53 = vld [vmem:[#allocation10 + $0x124] ss:$8 sps:$4 sm:$0xff]  }
 0x14d   :  { %2008 = vmatprep.subr.bf16.mxu1 %v2216_v54  ;;  %v2259_v54 = vld [vmem:[#allocation10 + $0x120] ss:$8 sps:$4 sm:$0xff]  }
 0x14f   :  { %753 = vmatpush1.bf16.msra.mxu0 %v2177_v21 }
 0x150   :  { %1069 = vmatprep.subr.bf16.mxu0 %v2182_v23  ;;  %2009 = vmatpush3.bf16.msra.mxu1 %v2217_v55  ;;  %v2264_v55 = vld [vmem:[#allocation10 + $0x114] ss:$8 sps:$4 sm:$0xff]  }
 0x151   :  { %2010 = vmatprep.subr.bf16.mxu1 %v2218_v56  ;;  %v2262_v56 = vld [vmem:[#allocation10 + $0x110] ss:$8 sps:$4 sm:$0xff]  }
 0x152   :  { %1855 = vmatmul.mubr.msk.bf16.vlgmr.msra.gmra.mxu0 %vm734_vm2, %v672_v24 }
 0x153   :  { %1070 = vmatpush1.bf16.msra.mxu0 %v2180_v25  ;;  %1101 = vmatprep.mubr.bf16.mxu0 %v2484_v0  ;;  %v2220_v25 = vld [vmem:[#allocation10 + $0x70] ss:$8 sps:$4 sm:$0xff]  }
 0x154   :  { %1071 = vmatprep.subr.bf16.mxu0 %v2185_v26  ;;  %2011 = vmatpush3.bf16.msra.mxu1 %v2219_v57  ;;  %v2267_v57 = vld [vmem:[#allocation10 + $0x104] ss:$8 sps:$4 sm:$0xff]  }
 0x155   :  { %1190 = vmatprep.subr.bf16.mxu1 %v2222_v58  ;;  %v2265_v58 = vld [vmem:[#allocation10 + $0x100] ss:$8 sps:$4 sm:$0xff]  }
 0x157   :  { %1072 = vmatpush1.bf16.msra.mxu0 %v2183_v27  ;;  %v2225_v27 = vld [vmem:[#allocation10 + $0x64] ss:$8 sps:$4 sm:$0xff]  }
 0x158   :  { %1073 = vmatprep.subr.bf16.mxu0 %v2188_v28  ;;  %v2223_v28 = vld [vmem:[#allocation10 + $0x60] ss:$8 sps:$4 sm:$0xff]  }
 0x15b   :  { %1074 = vmatpush1.bf16.msra.mxu0 %v2186_v29  ;;  %v2228_v29 = vld [vmem:[#allocation10 + $0x54] ss:$8 sps:$4 sm:$0xff]  }
 0x15c   :  { %1075 = vmatprep.subr.bf16.mxu0 %v2191_v30  ;;  %v2226_v30 = vld [vmem:[#allocation10 + $0x50] ss:$8 sps:$4 sm:$0xff]  }
 0x15f   :  { %1076 = vmatpush1.bf16.msra.mxu0 %v2189_v31  ;;  %v2231_v31 = vld [vmem:[#allocation10 + $0x44] ss:$8 sps:$4 sm:$0xff]  }
 0x160   :  { %1077 = vmatprep.subr.bf16.mxu0 %v2196_v34  ;;  %v2232_v34 = vld [vmem:[#allocation10 + $0x30] ss:$8 sps:$4 sm:$0xff]  }
 0x163   :  { %1078 = vmatpush1.bf16.msra.mxu0 %v2194_v35  ;;  %v2237_v35 = vld [vmem:[#allocation10 + $0x24] ss:$8 sps:$4 sm:$0xff]  }
 0x164   :  { %1079 = vmatprep.subr.bf16.mxu0 %v2201_v39  ;;  %v2238_v39 = vld [vmem:[#allocation10 + $0x10] ss:$8 sps:$4 sm:$0xff]  }
 0x167   :  { %1080 = vmatpush1.bf16.msra.mxu0 %v2199_v38  ;;  %v2240_v38 = vld [vmem:[#allocation10 + $0x14] ss:$8 sps:$4 sm:$0xff]  }
 0x168   :  { %1081 = vmatprep.subr.bf16.mxu0 %v2206_v42  ;;  %v2241_v42 = vld [vmem:[#allocation10] ss:$8 sps:$4 sm:$0xff]  }
 0x16b   :  { %1082 = vmatpush1.bf16.msra.mxu0 %v2204_v43 }
 0x16c   :  { %1083 = vmatprep.subr.bf16.mxu0 %v2211_v46  ;;  %v2252_v46 = vld [vmem:[#allocation10 + $0x154] ss:$8 sps:$4 sm:$0xff]  }
 0x16f   :  { %1084 = vmatpush1.bf16.msra.mxu0 %v2209_v47  ;;  %v2253_v47 = vld [vmem:[#allocation10 + $0x140] ss:$8 sps:$4 sm:$0xff]  }
 0x170   :  { %1329 = vmatprep.subr.bf16.mxu0 %v2246_v59  ;;  %v2268_v59 = vld [vmem:[#allocation9 + $0x1f8] sm:$0xff]  }
 0x1f6   :  { %v1968_v60 = vpop.f32.mrf.mxu1 }
 0x1f8   :  { %v1969_v61 = vpop.f32.mrf.mxu1 }
 0x1f9   :  { %v1970_v37 = vadd.f32 %v1969_v61, %v1968_v60  ;;  %v2269_v60 = vld [vmem:[#allocation9 + $0x1b8] sm:$0xff]   ;;  %v2270_v61 = vld [vmem:[#allocation9 + $0x1f0] sm:$0xff]  }
 0x1fa   :  { %v1971_v62 = vpop.f32.mrf.mxu1 }
 0x1fb   :  { %v2271_v62 = vld [vmem:[#allocation9 + $0x1b0] sm:$0xff]  }
 0x1fc   :  { %v1972_v63 = vpop.f32.mrf.mxu1 }
 0x1fd   :  { %v2272_v63 = vld [vmem:[#allocation9 + $0x1e8] sm:$0xff]  }
 0x202   :  { %v1990_v1 = vpop.f32.mrf.mxu0 }
 0x204   :  { %v1991_v3 = vpop.f32.mrf.mxu0 }
 0x205   :  { %v1992_v4 = vadd.f32 %v1991_v3, %v1990_v1  ;;  %v2273_v1 = vld [vmem:[#allocation9 + $0x1a8] sm:$0xff]   ;;  %v2275_v3 = vld [vmem:[#allocation9 + $0x1a0] sm:$0xff]  }
 0x206   :  { %v1993_v5 = vpop.f32.mrf.mxu0 }
 0x207   :  { %v665_v6 = vadd.f32 %v1992_v4, %v533_v2  ;;  %v2274_v2 = vld [vmem:[#allocation9 + $0x1e0] sm:$0xff]   ;;  %v2276_v4 = vld [vmem:[#allocation9 + $0x1d8] sm:$0xff]  }
 0x208   :  { %v1994_v7 = vpop.f32.mrf.mxu0  ;;  %v2277_v5 = vld [vmem:[#allocation9 + $0x198] sm:$0xff]  }
 0x209   :  { %v2602_v8 = vmax.f32 %v665_v6, 0.0 }
 0x20b   :  { %v971_v10 = vpack.c.bf16 %v2602_v8, %v2602_v8 }
 0x20d   :  { %1102 = vmatmul.mubr.bf16.vlgmr.msra.gmra.mxu0 %v971_v10 }
 0x20e   :  { %1330 = vmatpush1.bf16.msra.mxu0 %v2244_v9  ;;  %1361 = vmatprep.mubr.bf16.mxu0 %v2484_v0 }
 0x20f   :  { %1331 = vmatprep.subr.bf16.mxu0 %v2249_v11 }
 0x212   :  { %v772_v16 = vpop.f32.mrf.mxu0  ;;  %1332 = vmatpush1.bf16.msra.mxu0 %v2247_v13 }
 0x213   :  { %v773_v17 = vadd.f32 %v772_v16, %v687_v14  ;;  %1333 = vmatprep.subr.bf16.mxu0 %v2252_v46 }
 0x214   :  { %v774_v18 = vpop.f32.mrf.mxu0 }
 0x215   :  { %v775_v19 = vadd.f32 %v774_v18, %v691_v15  ;;  %v779_v20 = vmax.f32 %v773_v17, 0.0 }
 0x216   :  { %v776_v21 = vpop.f32.mrf.mxu0  ;;  %1334 = vmatpush1.bf16.msra.mxu0 %v2250_v45 }
 0x217   :  { %v780_v22 = vmax.f32 %v775_v19, 0.0  ;;  %v781_v26 = vpack.c.bf16 %v779_v20, %v779_v20  ;;  %1335 = vmatprep.subr.bf16.mxu0 %v2255_v48 }
 0x218   :  { %v777_v23 = vpop.f32.mrf.mxu0 }
 0x219   :  { %v782_v24 = vpack.c.bf16 %v780_v22, %v780_v22 }
 0x21a   :  { %1336 = vmatpush1.bf16.msra.mxu0 %v2253_v47 }
 0x21b   :  { %945 = vmatprep.mubr.bf16.mxu1 %v782_v24  ;;  %1337 = vmatprep.subr.bf16.mxu0 %v2258_v49 }
 0x21c   :  { %946 = vmatmul.mubr.bf16.vlgmr.msra.gmra.mxu1 %v781_v26  ;;  %v2278_v26 = vld [vmem:[#allocation9 + $0x1d0] sm:$0xff]  }
 0x21d   :  { %1191 = vmatpush1.bf16.msra.mxu1 %v2220_v25  ;;  %1222 = vmatprep.mubr.bf16.mxu1 %v2484_v0  ;;  %v262_v0 = vld [vmem:[#allocation13 + $0x4] ss:$0 sm:$0xff] }
 0x21e   :  { %1192 = vmatprep.subr.bf16.mxu1 %v2225_v27  ;;  %v394_v40 = vadd.f32 %v1970_v37, %v262_v0  ;;  %1338 = vmatpush1.bf16.msra.mxu0 %v2256_v51  ;;  %v2279_v27 = vld [vmem:[#allocation9 + $0x190] sm:$0xff]  }
 0x21f   :  { %1339 = vmatprep.subr.bf16.mxu0 %v2261_v53  ;;  %v2288_v37 = vld [vmem:[#allocation12 + $0x30] ss:$8 sps:$4 sm:$0xff]  }
 0x220   :  { %v2610_v43 = vmax.f32 %v394_v40, 0.0 }
 0x221   :  { %1193 = vmatpush1.bf16.msra.mxu1 %v2223_v28  ;;  %v2280_v28 = vld [vmem:[#allocation9 + $0x1c8] sm:$0xff]  }
 0x222   :  { %1194 = vmatprep.subr.bf16.mxu1 %v2228_v29  ;;  %v954_v44 = vpack.c.bf16 %v2610_v43, %v2610_v43  ;;  %1340 = vmatpush1.bf16.msra.mxu0 %v2259_v54  ;;  %v2281_v29 = vld [vmem:[#allocation9 + $0x188] sm:$0xff]  }
 0x223   :  { %1341 = vmatprep.subr.bf16.mxu0 %v2264_v55  ;;  %v2289_v55 = vld [vmem:[#allocation12 + $0x20] ss:$8 sps:$4 sm:$0xff]  }
 0x225   :  { %1195 = vmatpush1.bf16.msra.mxu1 %v2226_v30  ;;  %v2282_v30 = vld [vmem:[#allocation9 + $0x1c0] sm:$0xff]  }
 0x226   :  { %1196 = vmatprep.subr.bf16.mxu1 %v2231_v31  ;;  %1342 = vmatpush1.bf16.msra.mxu0 %v2262_v56  ;;  %v2283_v31 = vld [vmem:[#allocation9 + $0x180] sm:$0xff]  }
 0x227   :  { %1343 = vmatprep.subr.bf16.mxu0 %v2267_v57  ;;  %v1424_v57 = vld [vmem:[#allocation13 + $0x7] ss:$0 sm:$0xff] }
 0x229   :  { %1197 = vmatpush1.bf16.msra.mxu1 %v2229_v32  ;;  %v2284_v32 = vld [vmem:[#allocation12 + $0x70] ss:$8 sps:$4 sm:$0xff]  }
 0x22a   :  { %1198 = vmatprep.subr.bf16.mxu1 %v2234_v33  ;;  %1344 = vmatpush1.bf16.msra.mxu0 %v2265_v58  ;;  %v2485_v33 = vmov 0.0  }
 0x22b   :  { %2058 = vmatprep.subr.bf16.mxu0 %v2485_v33 }
 0x22d   :  { %1199 = vmatpush1.bf16.msra.mxu1 %v2232_v34  ;;  %v2285_v34 = vld [vmem:[#allocation12 + $0x60] ss:$8 sps:$4 sm:$0xff]  }
 0x22e   :  { %1200 = vmatprep.subr.bf16.mxu1 %v2237_v35  ;;  %v2286_v35 = vld [vmem:[#allocation12 + $0x50] ss:$8 sps:$4 sm:$0xff]  }
 0x231   :  { %1201 = vmatpush1.bf16.msra.mxu1 %v2235_v36  ;;  %v2287_v36 = vld [vmem:[#allocation12 + $0x40] ss:$8 sps:$4 sm:$0xff]  }
 0x232   :  { %1202 = vmatprep.subr.bf16.mxu1 %v2240_v38  ;;  %v1373_v38 = vld [vmem:[#allocation13 + $0x3] ss:$8 sm:$0x3] }
 0x233   :  { %v1378_v0 = vrot.slane %v1373_v38, %v2592_v50  ;;  %v2290_v50 = vld [vmem:[#allocation12 + $0x10] ss:$8 sps:$4 sm:$0xff]  }
 0x235   :  { %1203 = vmatpush1.bf16.msra.mxu1 %v2238_v39 }
 0x236   :  { %1204 = vmatprep.subr.bf16.mxu1 %v2243_v41  ;;  %v1382_v41 = vrot.slane %v1373_v38, %v2594_v52  ;;  %v2291_v52 = vld [vmem:[#allocation12] ss:$8 sps:$4 sm:$0xff]  }
 0x239   :  { %1205 = vmatpush1.bf16.msra.mxu1 %v2241_v42 }
 0x23a   :  { %2018 = vmatprep.subr.bf16.mxu1 %v2268_v59 }
 0x23c   :  { %1223 = vmatmul.mubr.bf16.vlgmr.msra.gmra.mxu1 %v954_v44 }
 0x23d   :  { %2019 = vmatpush3.bf16.msra.mxu1 %v2269_v60 }
 0x23e   :  { %2020 = vmatprep.subr.bf16.mxu1 %v2270_v61 }
 0x241   :  { %2021 = vmatpush3.bf16.msra.mxu1 %v2271_v62 }
 0x242   :  { %2022 = vmatprep.subr.bf16.mxu1 %v2272_v63 }
 0x245   :  { %2023 = vmatpush3.bf16.msra.mxu1 %v2273_v1 }
 0x246   :  { %2024 = vmatprep.subr.bf16.mxu1 %v2274_v2  ;;  %v2487_v2 = vmov 2  }
 0x247   :  { %2119 = vset.pattern.permute.xlu1 %v2487_v2 }
 0x249   :  { %2025 = vmatpush3.bf16.msra.mxu1 %v2275_v3  ;;  %v2292_v3 = vld [vmem:[#allocation12 + $0x74] ss:$8 sps:$4 sm:$0xff]  }
 0x24a   :  { %2026 = vmatprep.subr.bf16.mxu1 %v2276_v4  ;;  %v2293_v4 = vld [vmem:[#allocation12 + $0x64] ss:$8 sps:$4 sm:$0xff]  }
 0x24d   :  { %2027 = vmatpush3.bf16.msra.mxu1 %v2277_v5  ;;  %v2294_v5 = vld [vmem:[#allocation12 + $0x54] ss:$8 sps:$4 sm:$0xff]  }
 0x24e   :  { %2028 = vmatprep.subr.bf16.mxu1 %v2278_v26 }
 0x251   :  { %2029 = vmatpush3.bf16.msra.mxu1 %v2279_v27 }
 0x252   :  { %2030 = vmatprep.subr.bf16.mxu1 %v2280_v28 }
 0x255   :  { %2031 = vmatpush3.bf16.msra.mxu1 %v2281_v29  ;;  %v1704_v29 = vld [vmem:[#allocation13 + $0x18] ss:$0 sm:$0xff] }
 0x256   :  { %2032 = vmatprep.subr.bf16.mxu1 %v2282_v30 }
 0x259   :  { %2033 = vmatpush3.bf16.msra.mxu1 %v2283_v31 }
 0x25a   :  { %2078 = vmatprep.subr.bf16.mxu1 %v2485_v33 }
 0x2cd   :  { %v1103_v6 = vpop.f32.mrf.mxu0 }
 0x2cf   :  { %v1105_v7 = vpop.f32.mrf.mxu0 }
 0x2d1   :  { %v1107_v9 = vpop.f32.mrf.mxu0 }
 0x2d2   :  { %v1579_v9 = vld [vmem:[#allocation13 + $0x10] ss:$0 sm:$0xff] }
 0x2d3   :  { %v1108_v10 = vpop.f32.mrf.mxu0 }
 0x2d4   :  { %v2297_v10 = vld [vmem:[#allocation12 + $0x24] ss:$8 sps:$4 sm:$0xff]  }
 0x2dc   :  { %v2012_v11 = vpop.f32.mrf.mxu1 }
 0x2de   :  { %v2013_v13 = vpop.f32.mrf.mxu1 }
 0x2df   :  { %v2014_v14 = vadd.f32 %v2013_v13, %v2012_v11 }
 0x2e0   :  { %v2015_v15 = vpop.f32.mrf.mxu1 }
 0x2e1   :  { %v948_v16 = vadd.f32 %v2014_v14, %v816_v12  ;;  %v2298_v15 = vld [vmem:[#allocation12 + $0x14] ss:$8 sps:$4 sm:$0xff]  }
 0x2e2   :  { %v2016_v17 = vpop.f32.mrf.mxu1 }
 0x2e3   :  { %v2614_v18 = vmax.f32 %v948_v16, 0.0  ;;  %v2488_v17 = vmov 1  }
 0x2e5   :  { %v1231_v19 = vpack.c.bf16 %v2614_v18, %v2614_v18 }
 0x2e7   :  { %1362 = vmatmul.mubr.bf16.vlgmr.msra.gmra.mxu0 %v1231_v19  ;;  %v2299_v19 = vld [vmem:[#allocation12 + $0x4] ss:$8 sps:$4 sm:$0xff]  }
 0x2e8   :  { %2059 = vmatpush3.bf16.msra.mxu0 %v2284_v32  ;;  %2074 = vmatprep.mubr.msk.bf16.mxu0 %vm2486_vm3, %v2485_v33 }
 0x2e9   :  { %2060 = vmatprep.subr.bf16.mxu0 %v2485_v33 }
 0x2ec   :  { %2061 = vmatpush3.bf16.msra.mxu0 %v2285_v34 }
 0x2ed   :  { %2062 = vmatprep.subr.bf16.mxu0 %v2485_v33 }
 0x2f0   :  { %2063 = vmatpush3.bf16.msra.mxu0 %v2286_v35 }
 0x2f1   :  { %2064 = vmatprep.subr.bf16.mxu0 %v2485_v33 }
 0x2f4   :  { %2065 = vmatpush3.bf16.msra.mxu0 %v2287_v36 }
 0x2f5   :  { %2066 = vmatprep.subr.bf16.mxu0 %v2485_v33 }
 0x2f8   :  { %2067 = vmatpush3.bf16.msra.mxu0 %v2288_v37 }
 0x2f9   :  { %2068 = vmatprep.subr.bf16.mxu0 %v2485_v33 }
 0x2fc   :  { %v1224_v20 = vpop.f32.mrf.mxu1  ;;  %2069 = vmatpush3.bf16.msra.mxu0 %v2289_v55 }
 0x2fd   :  { %v1225_v21 = vadd.f32 %v1224_v20, %v1103_v6  ;;  %2070 = vmatprep.subr.bf16.mxu0 %v2485_v33  ;;  %v2295_v6 = vld [vmem:[#allocation12 + $0x44] ss:$8 sps:$4 sm:$0xff]  }
 0x2fe   :  { %v1226_v22 = vpop.f32.mrf.mxu1 }
 0x2ff   :  { %v1227_v23 = vadd.f32 %v1226_v22, %v1105_v7  ;;  %v2296_v7 = vld [vmem:[#allocation12 + $0x34] ss:$8 sps:$4 sm:$0xff]  }
 0x300   :  { %v1228_v24 = vpop.f32.mrf.mxu1  ;;  %2071 = vmatpush3.bf16.msra.mxu0 %v2290_v50 }
 0x301   :  { %2072 = vmatprep.subr.bf16.mxu0 %v2485_v33 }
 0x302   :  { %v1229_v25 = vpop.f32.mrf.mxu1 }
 0x304   :  { %2073 = vmatpush3.bf16.msra.mxu0 %v2291_v52 }
 0x3a7   :  { %v1363_v39 = vpop.f32.mrf.mxu0 }
 0x3a8   :  { %v1370_v40 = vadd.f32 %v1363_v39, %v1225_v21 }
 0x3a9   :  { %v1365_v42 = vpop.f32.mrf.mxu0 }
 0x3aa   :  { %v1385_v44 = vadd.f32 %v1378_v0, %v1370_v40  ;;  %v1371_v45 = vadd.f32 %v1365_v42, %v1227_v23 }
 0x3ab   :  { %v1367_v46 = vpop.f32.mrf.mxu0 }
 0x3ac   :  { %v1386_v47 = vadd.f32 %v1382_v41, %v1371_v45  ;;  %v1387_v48 = vmax.f32 %v1385_v44, 0.0 }
 0x3ad   :  { %v1368_v49 = vpop.f32.mrf.mxu0 }
 0x3ae   :  { %v1388_v51 = vmax.f32 %v1386_v47, 0.0  ;;  %v1389_v54 = vpack.c.bf16 %v1387_v48, %v1387_v48 }
 0x3b0   :  { %v1390_v53 = vpack.c.bf16 %v1388_v51, %v1388_v51 }
 0x3b2   :  { %1553 = vmatprep.mubr.bf16.mxu1 %v1390_v53 }
 0x3b3   :  { %1554 = vmatmul.mubr.bf16.vlgmr.msra.gmra.mxu1 %v1389_v54 }
 0x3b4   :  { %2094 = vmatprep.mubr.msk.bf16.mxu1 %vm2486_vm3, %v2485_v33  ;;  %2079 = vmatpush3.bf16.msra.mxu1 %v2292_v3 }
 0x3b5   :  { %2080 = vmatprep.subr.bf16.mxu1 %v2485_v33 }
 0x3b8   :  { %2081 = vmatpush3.bf16.msra.mxu1 %v2293_v4 }
 0x3b9   :  { %2082 = vmatprep.subr.bf16.mxu1 %v2485_v33 }
 0x3bc   :  { %2083 = vmatpush3.bf16.msra.mxu1 %v2294_v5 }
 0x3bd   :  { %2084 = vmatprep.subr.bf16.mxu1 %v2485_v33 }
 0x3c0   :  { %2085 = vmatpush3.bf16.msra.mxu1 %v2295_v6 }
 0x3c1   :  { %2086 = vmatprep.subr.bf16.mxu1 %v2485_v33 }
 0x3c4   :  { %2087 = vmatpush3.bf16.msra.mxu1 %v2296_v7 }
 0x3c5   :  { %2088 = vmatprep.subr.bf16.mxu1 %v2485_v33 }
 0x3c8   :  { %2089 = vmatpush3.bf16.msra.mxu1 %v2297_v10 }
 0x3c9   :  { %2090 = vmatprep.subr.bf16.mxu1 %v2485_v33 }
 0x3cc   :  { %2091 = vmatpush3.bf16.msra.mxu1 %v2298_v15 }
 0x3cd   :  { %2092 = vmatprep.subr.bf16.mxu1 %v2485_v33 }
 0x3d0   :  { %2093 = vmatpush3.bf16.msra.mxu1 %v2299_v19 }
 0x473   :  { %v2034_v56 = vpop.f32.mrf.mxu1 }
 0x475   :  { %v2035_v58 = vpop.f32.mrf.mxu1 }
 0x476   :  { %v2036_v59 = vadd.f32 %v2035_v58, %v2034_v56 }
 0x477   :  { %v2037_v60 = vpop.f32.mrf.mxu1 }
 0x478   :  { %v1556_v61 = vadd.f32 %v2036_v59, %v1424_v57 }
 0x479   :  { %v2038_v62 = vpop.f32.mrf.mxu1 }
 0x47a   :  { %v1561_v63 = vmax.f32 %v1556_v61, 0.0 }
 0x47c   :  { %v1562_v1 = vpack.c.bf16 %v1561_v63, %v1561_v63 }
 0x47e   :  { %2075 = vmatmul.mubr.bf16.vlgmr.msra.gmra.mxu0 %v1562_v1 }
 0x53e   :  { %v1662_v11 = vpop.f32.mrf.mxu0 }
 0x53f   :  { %v1663_v12 = vadd.f32 %v1662_v11, %v1579_v9 }
 0x540   :  { %v2076_v13 = vpop.f32.mrf.mxu0 }
 0x541   :  { %1681 = vperm.xlu1 %2119, %v1663_v12   ;;  %1670 = vperm.xlu0 %2117, %v1663_v12  }
 0x542   :  { %v1665_v14 = vpop.f32.mrf.mxu0 }
 0x544   :  { %v2077_v16 = vpop.f32.mrf.mxu0 }
 0x545   :  { %2118 = vset.pattern.permute.xlu0 %v2488_v17 }
 0x546   :  { %1675 = vperm.xlu0 %2118, %v1663_v12  }
 0x54a   :  { %2120 = vset.pattern.permute.xlu0 %v2487_v2 }
 0x5bc   :  { %v1671_v20 = vpop.permute.xlu0 %1670  ;;  %v1682_v21 = vpop.permute.xlu1 %1681 }
 0x5bd   :  { %v1673_v23 = vmul.f32 %v1671_v20, %v2610_v43  ;;  %v1684_v25 = vmul.f32 %v1682_v21, %v2614_v18 }
 0x5c1   :  { %v1676_v22 = vpop.permute.xlu0 %1675 }
 0x5c2   :  { %v1678_v24 = vmul.f32 %v1676_v22, %v2602_v8 }
 0x5c4   :  { %v1679_v26 = vadd.f32 %v1678_v24, %v1673_v23 }
 0x5c6   :  { %v1685_v27 = vadd.f32 %v1684_v25, %v1679_v26 }
 0x5c8   :  { %1686 = vst [vmem:[%s2657_s10] sm:$0xff] %v1685_v27  ;;  %v1687_v28 = vpack.c.bf16 %v1685_v27, %v1685_v27 }
 0x5ca   :  { %2095 = vmatmul.mubr.bf16.vlgmr.msra.gmra.mxu1 %v1687_v28 }
 0x68a   :  { %v1787_v30 = vpop.f32.mrf.mxu1 }
 0x68b   :  { %v1788_v31 = vadd.f32 %v1787_v30, %v1704_v29 }
 0x68c   :  { %v2096_v32 = vpop.f32.mrf.mxu1 }
 0x68d   :  { %1793 = vst [vmem:[%s2657_s10 + $0x8] sm:$0xff] %v1788_v31 }
 0x68e   :  { %v1790_v43 = vpop.f32.mrf.mxu1 }
 0x690   :  { %v2097_v8 = vpop.f32.mrf.mxu1 }
 0x691   :  { %1798 = vsyncpa [#allocation3], 1 }
 0x692   :  { %1799 = vsyncpa [#allocation5], 1 }
 0x693   :  { %1800 = vsyncpa [#allocation8], 1 }
 0x694   :  { %1801 = vsyncpa [#allocation11], 1 }
 0x695   :  { %1802 = vsyncpa [#allocation14], 1 }

</bundles_post_ra>
